<compile_context>
chip_gen: v5e
topology: v5e:2x2
jax: 0.10.0
libtpu: 0.0.40
codegen_flags: <defaults>
</compile_context>

<pallas_src>
from functools import partial

import jax
import jax.numpy as jnp
from jax.experimental import pallas as pl
from jax.experimental.pallas import tpu as pltpu

LANE = 128
SUBLANE = 8


def _round_up(n, m):
    return ((n + m - 1) // m) * m


# ----------------------------------------------------------------------------
# Kernel body: one fused fc1->ReLU->fc2->ReLU->fc3 chain per batch tile.
# ----------------------------------------------------------------------------
def dqn_kernel(x_ref, w1_ref, b1_ref, w2_ref, b2_ref, w3_ref, b3_ref, o_ref):
    # x arrives in f32 from HBM; cast to bf16 in-kernel (VPU slack is huge).
    x = x_ref[...].astype(jnp.bfloat16)                               # (TB, in)
    h1 = jnp.dot(x, w1_ref[...], preferred_element_type=jnp.float32) + b1_ref[...]
    h1 = jnp.maximum(h1, 0.0).astype(jnp.bfloat16)
    h2 = jnp.dot(h1, w2_ref[...], preferred_element_type=jnp.float32) + b2_ref[...]
    h2 = jnp.maximum(h2, 0.0).astype(jnp.bfloat16)
    out = jnp.dot(h2, w3_ref[...], preferred_element_type=jnp.float32) + b3_ref[...]
    o_ref[...] = out.astype(o_ref.dtype)


# ----------------------------------------------------------------------------
# One-time parameter preparation (hoisted out of the per-step forward).
# ----------------------------------------------------------------------------
def prepare_params(params):
    """Cast weights to bf16 (MXU operands) and biases to (1, n) f32, once."""
    w1, b1, w2, b2, w3, b3 = params
    return (
        jnp.asarray(w1, jnp.bfloat16), jnp.asarray(b1, jnp.float32).reshape(1, -1),
        jnp.asarray(w2, jnp.bfloat16), jnp.asarray(b2, jnp.float32).reshape(1, -1),
        jnp.asarray(w3, jnp.bfloat16), jnp.asarray(b3, jnp.float32).reshape(1, -1),
    )


# ----------------------------------------------------------------------------
# VMEM-budgeted batch-tile selection (static, shape-only arithmetic).
# ----------------------------------------------------------------------------
def _choose_tile(B, in_dim, hidden, out_dim, max_tile_b, vmem_budget=32 << 20):
    # Clamp user tile cap to a multiple of 8 sublanes (BlockSpec constraint).
    max_tile_b = max(SUBLANE, (int(max_tile_b) // SUBLANE) * SUBLANE)
    # Tile-independent VMEM: weights + biases (Pallas double-buffers even
    # constant-index inputs -> 2x their size).
    fixed = (2 * (in_dim * hidden + hidden * hidden + hidden * out_dim) * 2
             + 2 * (2 * hidden + out_dim) * 4)
    # Per batch-row VMEM: x f32 (double-buffered) + out f32 (double-buffered,
    # >=1 lane-padded vreg column) + in-kernel activation temporaries.
    per_row = 2 * in_dim * 4 + 2 * max(out_dim, LANE) * 4 + 6 * hidden * 4
    avail = max(vmem_budget - fixed, per_row * SUBLANE)
    fit = max(SUBLANE, (avail // per_row) // SUBLANE * SUBLANE)
    # Aim for >= 2 grid steps (v7x: both TensorCores get work); tiny B -> 1.
    target = _round_up(pl.cdiv(B, 2), SUBLANE)
    tile_b = int(min(max_tile_b, fit, target, _round_up(B, SUBLANE)))
    vmem_need = fixed + per_row * tile_b
    vmem_limit = int(min(max(vmem_need + (2 << 20), 16 << 20), 48 << 20))
    return tile_b, vmem_limit


# ----------------------------------------------------------------------------
# Forward pass (jitted; max_tile_b is a static knob).
# ----------------------------------------------------------------------------
@partial(jax.jit, static_argnames=("max_tile_b",))
def dqn_forward(x, prepared, *, max_tile_b=512):
    """x: (B, ...) — flattened from dim 1 onward, like torch.flatten(x, 1)."""
    w1, b1, w2, b2, w3, b3 = prepared
    B = x.shape[0]
    x_flat = x.reshape(B, -1).astype(jnp.float32)
    in_dim = x_flat.shape[1]
    hidden = w1.shape[1]
    out_dim = w3.shape[1]

    tile_b, vmem_limit = _choose_tile(B, in_dim, hidden, out_dim, max_tile_b)
    grid = (pl.cdiv(B, tile_b),)  # ragged last block handled by Pallas

    # Weights/biases: constant block index -> VMEM-resident across grid steps.
    resident = lambda shape: pl.BlockSpec(shape, lambda i: (0, 0))

    return pl.pallas_call(
        dqn_kernel,
        out_shape=jax.ShapeDtypeStruct((B, out_dim), jnp.float32),
        grid=grid,
        in_specs=[
            pl.BlockSpec((tile_b, in_dim), lambda i: (i, 0)),   # x tiles stream
            resident(w1.shape), resident(b1.shape),
            resident(w2.shape), resident(b2.shape),
            resident(w3.shape), resident(b3.shape),
        ],
        out_specs=pl.BlockSpec((tile_b, out_dim), lambda i: (i, 0)),
        compiler_params=pltpu.CompilerParams(
            dimension_semantics=("parallel",),   # v7x: shard batch over 2 TCs
            vmem_limit_bytes=vmem_limit),
    )(x_flat, w1, b1, w2, b2, w3, b3)


# ----------------------------------------------------------------------------
# Init / reference / test harness
# ----------------------------------------------------------------------------
def init_dqn_params(key, input_dim, output_dim, hidden=128):
    """Deterministic synthetic init; shapes match the nn.Linear layers."""
    ks = jax.random.split(key, 6)

    def lin(kw, kb, fan_in, fan_out):
        bound = 1.0 / jnp.sqrt(fan_in)
        w = jax.random.uniform(kw, (fan_in, fan_out), jnp.float32, -bound, bound)
        b = jax.random.uniform(kb, (1, fan_out), jnp.float32, -bound, bound)
        return w, b

    w1, b1 = lin(ks[0], ks[1], input_dim, hidden)
    w2, b2 = lin(ks[2], ks[3], hidden, hidden)
    w3, b3 = lin(ks[4], ks[5], hidden, output_dim)
    return (w1, b1, w2, b2, w3, b3)


def _reference(x, params):
    """Plain-JAX f32 reference (same math as the PyTorch module)."""
    w1, b1, w2, b2, w3, b3 = params
    xf = x.reshape(x.shape[0], -1).astype(jnp.float32)
    h = jnp.maximum(xf @ w1 + b1, 0.0)
    h = jnp.maximum(h @ w2 + b2, 0.0)
    return h @ w3 + b3


if __name__ == "__main__":
    key = jax.random.PRNGKey(0)
    k_x, k_x2, k_p = jax.random.split(key, 3)

    # Small example: batch=2, state tensor (4, 16, 16) -> input_dim=1024.
    B, C, H, W = 2, 4, 16, 16
    input_dim = C * H * W
    output_dim = 4

    x = jax.random.normal(k_x, (B, C, H, W), jnp.float32)
    params = init_dqn_params(k_p, input_dim, output_dim)
    prepared = prepare_params(params)          # one-time weight prep (hoisted)
    jax.block_until_ready(prepared)

    # Fast path: single grid step (B=2 -> 8-row tile, grid=(1,)).
    out = dqn_forward(x, prepared)
    jax.block_until_ready(out)
    ref = _reference(x, params)
    assert out.shape == (B, output_dim)
    # bf16 MXU operands with f32 accumulation -> loosened tolerance vs f32 ref.
    assert jnp.allclose(out, ref, atol=5e-2, rtol=5e-2), (
        float(jnp.max(jnp.abs(out - ref))))

    # Tiled path: batch not a tile multiple, small max_tile_b forces a
    # multi-step grid with a ragged last block (40 = 16 + 16 + 8 valid rows).
    B2 = 40
    x2 = jax.random.normal(k_x2, (B2, C, H, W), jnp.float32)
    out2 = dqn_forward(x2, prepared, max_tile_b=16)
    jax.block_until_ready(out2)
    ref2 = _reference(x2, params)
    assert out2.shape == (B2, output_dim)
    assert jnp.allclose(out2, ref2, atol=5e-2, rtol=5e-2), (
        float(jnp.max(jnp.abs(out2 - ref2))))

    print("KERNEL_OK")
</pallas_src>

<mosaic_0001>
module attributes {stable_mosaic.version = 11 : i64} {
  func.func @dqn_kernel(%arg0: i32, %arg1: memref<8x1024xf32, #tpu.memory_space<vmem>>, %arg2: memref<1024x128xbf16, #tpu.memory_space<vmem>>, %arg3: memref<1x128xf32, #tpu.memory_space<vmem>>, %arg4: memref<128x128xbf16, #tpu.memory_space<vmem>>, %arg5: memref<1x128xf32, #tpu.memory_space<vmem>>, %arg6: memref<128x4xbf16, #tpu.memory_space<vmem>>, %arg7: memref<1x4xf32, #tpu.memory_space<vmem>>, %arg8: memref<8x4xf32, #tpu.memory_space<vmem>>) attributes {dimension_semantics = [#tpu.dimension_semantics<parallel>], iteration_bounds = array<i64: 1>, scalar_prefetch = 0 : i64, scratch_operands = 0 : i64, tpu.core_type = #tpu.core_type<tc>, window_params = [{transform_indices = @transform_0, window_bounds = array<i64: 8, 1024>}, {pipeline_mode = #tpu.pipeline_mode<synchronous>, transform_indices = @transform_1, window_bounds = array<i64: 1024, 128>}, {pipeline_mode = #tpu.pipeline_mode<synchronous>, transform_indices = @transform_2, window_bounds = array<i64: 1, 128>}, {pipeline_mode = #tpu.pipeline_mode<synchronous>, transform_indices = @transform_3, window_bounds = array<i64: 128, 128>}, {pipeline_mode = #tpu.pipeline_mode<synchronous>, transform_indices = @transform_4, window_bounds = array<i64: 1, 128>}, {pipeline_mode = #tpu.pipeline_mode<synchronous>, transform_indices = @transform_5, window_bounds = array<i64: 128, 4>}, {pipeline_mode = #tpu.pipeline_mode<synchronous>, transform_indices = @transform_6, window_bounds = array<i64: 1, 4>}, {transform_indices = @transform_7, window_bounds = array<i64: 8, 4>}]} {
    %c0 = arith.constant 0 : index
    %c0_0 = arith.constant 0 : index
    %0 = vector.load %arg1[%c0, %c0_0] : memref<8x1024xf32, #tpu.memory_space<vmem>>, vector<8x1024xf32>
    %1 = arith.truncf %0 : vector<8x1024xf32> to vector<8x1024xbf16>
    %c0_1 = arith.constant 0 : index
    %c0_2 = arith.constant 0 : index
    %2 = vector.load %arg2[%c0_1, %c0_2] : memref<1024x128xbf16, #tpu.memory_space<vmem>>, vector<1024x128xbf16>
    %cst = arith.constant dense<0.000000e+00> : vector<8x128xf32>
    %3 = tpu.matmul %1, %2, %cst {dimension_numbers = #tpu.dot_dimension_numbers<[1], [0], [0], [1], [0, 0, 1, 1], [], []>} : vector<8x1024xbf16>, vector<1024x128xbf16>, vector<8x128xf32> -> vector<8x128xf32>
    %c0_3 = arith.constant 0 : index
    %c0_4 = arith.constant 0 : index
    %4 = vector.load %arg3[%c0_3, %c0_4] : memref<1x128xf32, #tpu.memory_space<vmem>>, vector<1x128xf32>
    %5 = vector.broadcast %4 : vector<1x128xf32> to vector<8x128xf32>
    %6 = arith.addf %3, %5 : vector<8x128xf32>
    %cst_5 = arith.constant 0.000000e+00 : f32
    %7 = vector.broadcast %cst_5 : f32 to vector<8x128xf32>
    %8 = arith.maximumf %6, %7 : vector<8x128xf32>
    %9 = arith.truncf %8 : vector<8x128xf32> to vector<8x128xbf16>
    %c0_6 = arith.constant 0 : index
    %c0_7 = arith.constant 0 : index
    %10 = vector.load %arg4[%c0_6, %c0_7] : memref<128x128xbf16, #tpu.memory_space<vmem>>, vector<128x128xbf16>
    %cst_8 = arith.constant dense<0.000000e+00> : vector<8x128xf32>
    %11 = tpu.matmul %9, %10, %cst_8 {dimension_numbers = #tpu.dot_dimension_numbers<[1], [0], [0], [1], [0, 0, 1, 1], [], []>} : vector<8x128xbf16>, vector<128x128xbf16>, vector<8x128xf32> -> vector<8x128xf32>
    %c0_9 = arith.constant 0 : index
    %c0_10 = arith.constant 0 : index
    %12 = vector.load %arg5[%c0_9, %c0_10] : memref<1x128xf32, #tpu.memory_space<vmem>>, vector<1x128xf32>
    %13 = vector.broadcast %12 : vector<1x128xf32> to vector<8x128xf32>
    %14 = arith.addf %11, %13 : vector<8x128xf32>
    %cst_11 = arith.constant 0.000000e+00 : f32
    %15 = vector.broadcast %cst_11 : f32 to vector<8x128xf32>
    %16 = arith.maximumf %14, %15 : vector<8x128xf32>
    %17 = arith.truncf %16 : vector<8x128xf32> to vector<8x128xbf16>
    %c0_12 = arith.constant 0 : index
    %c0_13 = arith.constant 0 : index
    %18 = vector.load %arg6[%c0_12, %c0_13] : memref<128x4xbf16, #tpu.memory_space<vmem>>, vector<128x4xbf16>
    %cst_14 = arith.constant dense<0.000000e+00> : vector<8x4xf32>
    %19 = tpu.matmul %17, %18, %cst_14 {dimension_numbers = #tpu.dot_dimension_numbers<[1], [0], [0], [1], [0, 0, 1, 1], [], []>} : vector<8x128xbf16>, vector<128x4xbf16>, vector<8x4xf32> -> vector<8x4xf32>
    %c0_15 = arith.constant 0 : index
    %c0_16 = arith.constant 0 : index
    %20 = vector.load %arg7[%c0_15, %c0_16] : memref<1x4xf32, #tpu.memory_space<vmem>>, vector<1x4xf32>
    %21 = vector.broadcast %20 : vector<1x4xf32> to vector<8x4xf32>
    %22 = arith.addf %19, %21 : vector<8x4xf32>
    %c0_17 = arith.constant 0 : index
    %c0_18 = arith.constant 0 : index
    %23 = vector.load %arg8[%c0_17, %c0_18] : memref<8x4xf32, #tpu.memory_space<vmem>>, vector<8x4xf32>
    tpu.vector_store %arg8[%c0_17, %c0_18], %22 {strides = array<i32>} : memref<8x4xf32, #tpu.memory_space<vmem>>, vector<8x4xf32>,
    return
  }
  func.func @transform_0(%arg0: i32) -> (i32, i32) {
    %c0_i32 = arith.constant 0 : i32
    %c0_i32_0 = arith.constant 0 : i32
    return %arg0, %c0_i32 : i32, i32
  }
  func.func @transform_1(%arg0: i32) -> (i32, i32) {
    %c0_i32 = arith.constant 0 : i32
    %c0_i32_0 = arith.constant 0 : i32
    %c0_i32_1 = arith.constant 0 : i32
    return %c0_i32, %c0_i32_0 : i32, i32
  }
  func.func @transform_2(%arg0: i32) -> (i32, i32) {
    %c0_i32 = arith.constant 0 : i32
    %c0_i32_0 = arith.constant 0 : i32
    %c0_i32_1 = arith.constant 0 : i32
    return %c0_i32, %c0_i32_0 : i32, i32
  }
  func.func @transform_3(%arg0: i32) -> (i32, i32) {
    %c0_i32 = arith.constant 0 : i32
    %c0_i32_0 = arith.constant 0 : i32
    %c0_i32_1 = arith.constant 0 : i32
    return %c0_i32, %c0_i32_0 : i32, i32
  }
  func.func @transform_4(%arg0: i32) -> (i32, i32) {
    %c0_i32 = arith.constant 0 : i32
    %c0_i32_0 = arith.constant 0 : i32
    %c0_i32_1 = arith.constant 0 : i32
    return %c0_i32, %c0_i32_0 : i32, i32
  }
  func.func @transform_5(%arg0: i32) -> (i32, i32) {
    %c0_i32 = arith.constant 0 : i32
    %c0_i32_0 = arith.constant 0 : i32
    %c0_i32_1 = arith.constant 0 : i32
    return %c0_i32, %c0_i32_0 : i32, i32
  }
  func.func @transform_6(%arg0: i32) -> (i32, i32) {
    %c0_i32 = arith.constant 0 : i32
    %c0_i32_0 = arith.constant 0 : i32
    %c0_i32_1 = arith.constant 0 : i32
    return %c0_i32, %c0_i32_0 : i32, i32
  }
  func.func @transform_7(%arg0: i32) -> (i32, i32) {
    %c0_i32 = arith.constant 0 : i32
    %c0_i32_0 = arith.constant 0 : i32
    return %arg0, %c0_i32 : i32, i32
  }
}

</mosaic_0001>

<bundles_post_ra>
// kernel: dqn_forward.1
= control target key start
LH: loop header
LB: loop body
LE: loop exit
PB: predicated region body
PF: predicated region fallthrough
CT: control target
= control target key end

     0   :  { %12 = vsyncpa [#allocation3], 0  ;;  %s1499_s0 = inlined_call_operand.vmem [shape: f32[2,1024], index: 0, kind: input, shape index: {}]   ;;  %s1500_s1 = inlined_call_operand.hbm [shape: bf16[1024,128], index: 1, kind: input, shape index: {}]   ;;  %s1501_s2 = inlined_call_operand.vmem [shape: f32[1,128], index: 2, kind: input, shape index: {}]   ;;  %s1502_s3 = inlined_call_operand.vmem [shape: bf16[128,128], index: 3, kind: input, shape index: {}]   ;;  %s1503_s4 = inlined_call_operand.vmem [shape: f32[1,128], index: 4, kind: input, shape index: {}]   ;;  %s1504_s5 = inlined_call_operand.vmem [shape: bf16[128,4], index: 5, kind: input, shape index: {}]   ;;  %s1505_s6 = inlined_call_operand.vmem [shape: f32[1,4], index: 6, kind: input, shape index: {}]   ;;  %s1506_s7 = inlined_call_operand.hbm [shape: f32[2,4], index: 7, kind: output, shape index: {}]  }
   0x1   :  { %13 = vsyncpa [#allocation4], 0  ;;  %s20_s26 = sshll.u32 %s1500_s1, 4  ;;  %s1366_s27 = smov [#allocation2]   ;;  %s21_s26 = int_to_ptr.hbm [resolvable:$true] %s20_s26 }
   0x2   :  { %s22_s28 = sshll.u32 %s1366_s27, 4  ;;  %s1367_s29 = smov 64   ;;  %s23_s28 = int_to_ptr.vmem [resolvable:$true] %s22_s28 }
   0x3   :  { %s1368_s30 = smov 4  }
   0x4   :  { %28 = dma.hbm_to_vmem [thread:$0]  %s21_s26, 8192, %s23_s28, [#allocation3], %s1367_s29, %s1367_s29, %s1368_s30  }
   0x5   :  { %1362 = dma.done.wait [#allocation3], 8192  }
   0x6   :  { %1363 = vsyncadd [#allocation3], 4294959104  ;;  %v1232_v0 = vld [vmem:[#allocation2 + $0x38] sm:$0xff]  ;;  %v1231_v4 = vld [vmem:[#allocation2 + $0x30] sm:$0xff]  ;;  %vm884_vm0 = vcmask 31744  }
   0x7   :  { %v1240_v1 = vld [vmem:[#allocation2 + $0x78] sm:$0xff]  ;;  %614 = vmatpush.bf16.msra.mxu0 %v1232_v0  ;;  %v1239_v5 = vld [vmem:[#allocation2 + $0x70] sm:$0xff]  ;;  %v1230_v8 = vld [vmem:[#allocation2 + $0x28] sm:$0xff] }
   0x8   :  { %v1248_v2 = vld [vmem:[#allocation2 + $0xb8] sm:$0xff]  ;;  %627 = vmatpush.bf16.msra.mxu1 %v1240_v1  ;;  %v1247_v6 = vld [vmem:[#allocation2 + $0xb0] sm:$0xff]  ;;  %v1238_v9 = vld [vmem:[#allocation2 + $0x68] sm:$0xff] }
   0x9   :  { %v1256_v3 = vld [vmem:[#allocation2 + $0xf8] sm:$0xff]  ;;  %640 = vmatpush.bf16.msra.mxu2 %v1248_v2  ;;  %v1255_v7 = vld [vmem:[#allocation2 + $0xf0] sm:$0xff]  ;;  %v1246_v10 = vld [vmem:[#allocation2 + $0xa8] sm:$0xff] }
   0xa   :  { %653 = vmatpush.bf16.msra.mxu3 %v1256_v3  ;;  %v1254_v11 = vld [vmem:[#allocation2 + $0xe8] sm:$0xff]  ;;  %v1229_v12 = vld [vmem:[#allocation2 + $0x20] sm:$0xff]  ;;  %v1228_v16 = vld [vmem:[#allocation2 + $0x18] sm:$0xff] }
   0xb   :  { %615 = vmatpush.bf16.msra.mxu0 %v1231_v4  ;;  %v1237_v13 = vld [vmem:[#allocation2 + $0x60] sm:$0xff]  ;;  %v43_v17 = vld [vmem:[%s1499_s0] sm:$0xff]  ;;  %v45_v18 = vld [vmem:[%s1499_s0 + $0x10] sm:$0xff] }
   0xc   :  { %628 = vmatpush.bf16.msra.mxu1 %v1239_v5  ;;  %v1245_v14 = vld [vmem:[#allocation2 + $0xa0] sm:$0xff]  ;;  %v1236_v19 = vld [vmem:[#allocation2 + $0x58] sm:$0xff]  ;;  %v49_v21 = vld [vmem:[%s1499_s0 + $0x30] sm:$0xff]  ;;  %59 = vst [vmem:[#allocation1] ss:$4 sm:$0xff] %v43_v17 }
   0xd   :  { %641 = vmatpush.bf16.msra.mxu2 %v1247_v6  ;;  %v1253_v15 = vld [vmem:[#allocation2 + $0xe0] sm:$0xff]  ;;  %v47_v20 = vld [vmem:[%s1499_s0 + $0x20] sm:$0xff]  ;;  %61 = vst [vmem:[#allocation1 + $0x1] ss:$4 sm:$0xff] %v45_v18  ;;  %v1227_v24 = vld [vmem:[#allocation2 + $0x10] sm:$0xff] }
   0xe   :  { %654 = vmatpush.bf16.msra.mxu3 %v1255_v7  ;;  %v1244_v22 = vld [vmem:[#allocation2 + $0x98] sm:$0xff]  ;;  %63 = vst [vmem:[#allocation1 + $0x2] ss:$4 sm:$0xff] %v47_v20  ;;  %v1235_v25 = vld [vmem:[#allocation2 + $0x50] sm:$0xff]  ;;  %v44_v28 = vld [vmem:[%s1499_s0 + $0x8] sm:$0xff] }
   0xf   :  { %616 = vmatpush.bf16.msra.mxu0 %v1230_v8  ;;  %v1252_v23 = vld [vmem:[#allocation2 + $0xd8] sm:$0xff]  ;;  %65 = vst [vmem:[#allocation1 + $0x3] ss:$4 sm:$0xff] %v49_v21  ;;  %v1243_v26 = vld [vmem:[#allocation2 + $0x90] sm:$0xff]  ;;  %v1226_v30 = vld [vmem:[#allocation2 + $0x8] sm:$0xff] }
  0x10   :  { %629 = vmatpush.bf16.msra.mxu1 %v1238_v9  ;;  %v1251_v27 = vld [vmem:[#allocation2 + $0xd0] sm:$0xff]  ;;  %v1234_v31 = vld [vmem:[#allocation2 + $0x48] sm:$0xff]  ;;  %67 = vst [vmem:[#allocation1 + $0x20] ss:$4 sm:$0xff] %v44_v28  ;;  %v48_v34 = vld [vmem:[%s1499_s0 + $0x28] sm:$0xff] }
  0x11   :  { %642 = vmatpush.bf16.msra.mxu2 %v1246_v10  ;;  %v46_v29 = vld [vmem:[%s1499_s0 + $0x18] sm:$0xff]  ;;  %v1242_v32 = vld [vmem:[#allocation2 + $0x88] sm:$0xff]  ;;  %v1225_v35 = vld [vmem:[#allocation2] sm:$0xff]  ;;  %71 = vst [vmem:[#allocation1 + $0x22] ss:$4 sm:$0xff] %v48_v34 }
  0x12   :  { %655 = vmatpush.bf16.msra.mxu3 %v1254_v11  ;;  %v1250_v33 = vld [vmem:[#allocation2 + $0xc8] sm:$0xff]  ;;  %69 = vst [vmem:[#allocation1 + $0x21] ss:$4 sm:$0xff] %v46_v29  ;;  %v50_v36 = vld [vmem:[%s1499_s0 + $0x38] sm:$0xff]  ;;  %v1233_v37 = vld [vmem:[#allocation2 + $0x40] sm:$0xff] }
  0x13   :  { %617 = vmatpush.bf16.msra.mxu0 %v1229_v12  ;;  %v1241_v38 = vld [vmem:[#allocation2 + $0x80] sm:$0xff]  ;;  %v1264_v40 = vld [vmem:[#allocation2 + $0x138] sm:$0xff]  ;;  %73 = vst [vmem:[#allocation1 + $0x23] ss:$4 sm:$0xff] %v50_v36  ;;  %v1263_v52 = vld [vmem:[#allocation2 + $0x130] sm:$0xff] }
  0x14   :  { %630 = vmatpush.bf16.msra.mxu1 %v1237_v13  ;;  %v1249_v39 = vld [vmem:[#allocation2 + $0xc0] sm:$0xff]  ;;  %v1272_v42 = vld [vmem:[#allocation2 + $0x178] sm:$0xff]  ;;  %v1271_v53 = vld [vmem:[#allocation2 + $0x170] sm:$0xff] }
  0x15   :  { %643 = vmatpush.bf16.msra.mxu2 %v1245_v14  ;;  %v1280_v46 = vld [vmem:[#allocation2 + $0x1b8] sm:$0xff]  ;;  %v1279_v54 = vld [vmem:[#allocation2 + $0x1b0] sm:$0xff]  ;;  %v1262_v56 = vld [vmem:[#allocation2 + $0x128] sm:$0xff] }
  0x16   :  { %656 = vmatpush.bf16.msra.mxu3 %v1253_v15  ;;  %v76_v41 = vld.sshfl [vmem:[#allocation1 + $0x10] sm:$0xff pattern:$0x73625140]  ;;  %v74_v43 = vld.sshfl [vmem:[#allocation1] sm:$0xff pattern:$0x73625140] }
  0x17   :  { %618 = vmatpush.bf16.msra.mxu0 %v1228_v16  ;;  %v77_v44 = vld.sshfl [vmem:[#allocation1 + $0x18] sm:$0xff pattern:$0x73625140]  ;;  %v75_v45 = vld.sshfl [vmem:[#allocation1 + $0x8] sm:$0xff pattern:$0x73625140]  ;;  %v92_v48 = vpack.c.bf16 %v76_v41, %v76_v41  ;;  %v90_v49 = vpack.c.bf16 %v74_v43, %v74_v43 }
  0x18   :  { %631 = vmatpush.bf16.msra.mxu1 %v1236_v19  ;;  %v1288_v47 = vld [vmem:[#allocation2 + $0x1f8] sm:$0xff]  ;;  %v93_v50 = vpack.c.bf16 %v77_v44, %v77_v44  ;;  %v91_v51 = vpack.c.bf16 %v75_v45, %v75_v45  ;;  %v1287_v55 = vld [vmem:[#allocation2 + $0x1f0] sm:$0xff]  ;;  %v1270_v57 = vld [vmem:[#allocation2 + $0x168] sm:$0xff] }
  0x19   :  { %644 = vmatpush.bf16.msra.mxu2 %v1244_v22  ;;  %v1278_v58 = vld [vmem:[#allocation2 + $0x1a8] sm:$0xff]  ;;  %v1261_v60 = vld [vmem:[#allocation2 + $0x120] sm:$0xff]  ;;  %v1260_v0 = vld [vmem:[#allocation2 + $0x118] sm:$0xff] }
  0x1a   :  { %657 = vmatpush.bf16.msra.mxu3 %v1252_v23  ;;  %v1286_v59 = vld [vmem:[#allocation2 + $0x1e8] sm:$0xff]  ;;  %v1269_v61 = vld [vmem:[#allocation2 + $0x160] sm:$0xff]  ;;  %v1268_v1 = vld [vmem:[#allocation2 + $0x158] sm:$0xff] }
  0x1b   :  { %619 = vmatpush.bf16.msra.mxu0 %v1227_v24  ;;  %v1277_v62 = vld [vmem:[#allocation2 + $0x1a0] sm:$0xff]  ;;  %v1276_v2 = vld [vmem:[#allocation2 + $0x198] sm:$0xff]  ;;  %v1259_v4 = vld [vmem:[#allocation2 + $0x110] sm:$0xff] }
  0x1c   :  { %632 = vmatpush.bf16.msra.mxu1 %v1235_v25  ;;  %v1285_v63 = vld [vmem:[#allocation2 + $0x1e0] sm:$0xff]  ;;  %v1284_v3 = vld [vmem:[#allocation2 + $0x1d8] sm:$0xff]  ;;  %v1267_v5 = vld [vmem:[#allocation2 + $0x150] sm:$0xff] }
  0x1d   :  { %645 = vmatpush.bf16.msra.mxu2 %v1243_v26  ;;  %v1275_v6 = vld [vmem:[#allocation2 + $0x190] sm:$0xff]  ;;  %v1258_v8 = vld [vmem:[#allocation2 + $0x108] sm:$0xff]  ;;  %v1257_v12 = vld [vmem:[#allocation2 + $0x100] sm:$0xff] }
  0x1e   :  { %658 = vmatpush.bf16.msra.mxu3 %v1251_v27  ;;  %v1283_v7 = vld [vmem:[#allocation2 + $0x1d0] sm:$0xff]  ;;  %v1266_v9 = vld [vmem:[#allocation2 + $0x148] sm:$0xff]  ;;  %v1265_v13 = vld [vmem:[#allocation2 + $0x140] sm:$0xff] }
  0x1f   :  { %620 = vmatpush.bf16.msra.mxu0 %v1226_v30  ;;  %v1274_v10 = vld [vmem:[#allocation2 + $0x188] sm:$0xff]  ;;  %v1273_v14 = vld [vmem:[#allocation2 + $0x180] sm:$0xff]  ;;  %v78_v16 = vld.sshfl [vmem:[#allocation1 + $0x20] sm:$0xff pattern:$0x73625140] }
  0x20   :  { %633 = vmatpush.bf16.msra.mxu1 %v1234_v31  ;;  %v1282_v11 = vld [vmem:[#allocation2 + $0x1c8] sm:$0xff]  ;;  %v1281_v15 = vld [vmem:[#allocation2 + $0x1c0] sm:$0xff]  ;;  %v81_v19 = vld.sshfl [vmem:[#allocation1 + $0x38] sm:$0xff pattern:$0x73625140]  ;;  %v94_v20 = vpack.c.bf16 %v78_v16, %v78_v16 }
  0x21   :  { %646 = vmatpush.bf16.msra.mxu2 %v1242_v32  ;;  %v79_v17 = vld.sshfl [vmem:[#allocation1 + $0x28] sm:$0xff pattern:$0x73625140]  ;;  %v80_v18 = vld.sshfl [vmem:[#allocation1 + $0x30] sm:$0xff pattern:$0x73625140]  ;;  %v97_v23 = vpack.c.bf16 %v81_v19, %v81_v19 }
  0x22   :  { %659 = vmatpush.bf16.msra.mxu3 %v1250_v33  ;;  %v95_v21 = vpack.c.bf16 %v79_v17, %v79_v17  ;;  %v96_v22 = vpack.c.bf16 %v80_v18, %v80_v18  ;;  %v1296_v24 = vld [vmem:[%s1502_s3 + $0x38] sm:$0xff]  ;;  %v1295_v25 = vld [vmem:[%s1502_s3 + $0x30] sm:$0xff]  ;;  %v1294_v26 = vld [vmem:[%s1502_s3 + $0x28] sm:$0xff] }
  0x23   :  { %621 = vmatpush.bf16.msra.mxu0 %v1225_v35  ;;  %v1293_v27 = vld [vmem:[%s1502_s3 + $0x20] sm:$0xff]  ;;  %v1292_v28 = vld [vmem:[%s1502_s3 + $0x18] sm:$0xff]  ;;  %v1291_v30 = vld [vmem:[%s1502_s3 + $0x10] sm:$0xff] }
  0x24   :  { %634 = vmatpush.bf16.msra.mxu1 %v1233_v37  ;;  %v1290_v32 = vld [vmem:[%s1502_s3 + $0x8] sm:$0xff]  ;;  %v1289_v36 = vld [vmem:[%s1502_s3] sm:$0xff] }
  0x25   :  { %647 = vmatpush.bf16.msra.mxu2 %v1241_v38  ;;  %v1311_v38 = vld [vmem:[%s1501_s2] ss:$0 sm:$0xff]  ;;  %v1302_v44 = vld [vmem:[%s1504_s5 + $0x28] sm:$0xff] }
  0x26   :  { %660 = vmatpush.bf16.msra.mxu3 %v1249_v39  ;;  %622 = vmatmul.bf16.vlgmr.msra.gmra.mxu0 %v90_v49  ;;  %v1304_v39 = vld [vmem:[%s1504_s5 + $0x38] sm:$0xff] }
  0x27   :  { %666 = vmatpush.bf16.msrb.mxu0 %v1264_v40  ;;  %635 = vmatmul.bf16.vlgmr.msra.gmra.mxu1 %v91_v51 }
  0x28   :  { %679 = vmatpush.bf16.msrb.mxu1 %v1272_v42  ;;  %648 = vmatmul.bf16.vlgmr.msra.gmra.mxu2 %v92_v48  ;;  %v1303_v42 = vld [vmem:[%s1504_s5 + $0x30] sm:$0xff]  ;;  %v1300_v48 = vld [vmem:[%s1504_s5 + $0x18] sm:$0xff] }
  0x29   :  { %692 = vmatpush.bf16.msrb.mxu2 %v1280_v46  ;;  %661 = vmatmul.bf16.vlgmr.msra.gmra.mxu3 %v93_v50  ;;  %v1301_v46 = vld [vmem:[%s1504_s5 + $0x20] sm:$0xff] }
  0x2a   :  { %705 = vmatpush.bf16.msrb.mxu3 %v1288_v47 }
  0x2b   :  { %667 = vmatpush.bf16.msrb.mxu0 %v1263_v52 }
  0x2c   :  { %680 = vmatpush.bf16.msrb.mxu1 %v1271_v53  ;;  %v1299_v53 = vld [vmem:[%s1504_s5 + $0x10] sm:$0xff] }
  0x2d   :  { %693 = vmatpush.bf16.msrb.mxu2 %v1279_v54 }
  0x2e   :  { %706 = vmatpush.bf16.msrb.mxu3 %v1287_v55 }
  0x2f   :  { %668 = vmatpush.bf16.msrb.mxu0 %v1262_v56 }
  0x30   :  { %681 = vmatpush.bf16.msrb.mxu1 %v1270_v57 }
  0x31   :  { %694 = vmatpush.bf16.msrb.mxu2 %v1278_v58 }
  0x32   :  { %707 = vmatpush.bf16.msrb.mxu3 %v1286_v59 }
  0x33   :  { %669 = vmatpush.bf16.msrb.mxu0 %v1261_v60 }
  0x34   :  { %682 = vmatpush.bf16.msrb.mxu1 %v1269_v61 }
  0x35   :  { %695 = vmatpush.bf16.msrb.mxu2 %v1277_v62 }
  0x36   :  { %708 = vmatpush.bf16.msrb.mxu3 %v1285_v63 }
  0x37   :  { %670 = vmatpush.bf16.msrb.mxu0 %v1260_v0 }
  0x38   :  { %683 = vmatpush.bf16.msrb.mxu1 %v1268_v1  ;;  %v1298_v1 = vld [vmem:[%s1504_s5 + $0x8] sm:$0xff] }
  0x39   :  { %696 = vmatpush.bf16.msrb.mxu2 %v1276_v2  ;;  %v1297_v2 = vld [vmem:[%s1504_s5] sm:$0xff] }
  0x3a   :  { %709 = vmatpush.bf16.msrb.mxu3 %v1284_v3  ;;  %v1312_v3 = vld [vmem:[%s1503_s4] ss:$0 sm:$0xff] }
  0x3b   :  { %671 = vmatpush.bf16.msrb.mxu0 %v1259_v4 }
  0x3c   :  { %684 = vmatpush.bf16.msrb.mxu1 %v1267_v5 }
  0x3d   :  { %697 = vmatpush.bf16.msrb.mxu2 %v1275_v6 }
  0x3e   :  { %710 = vmatpush.bf16.msrb.mxu3 %v1283_v7 }
  0x3f   :  { %672 = vmatpush.bf16.msrb.mxu0 %v1258_v8 }
  0x40   :  { %685 = vmatpush.bf16.msrb.mxu1 %v1266_v9  ;;  %v1313_v9 = vld [vmem:[%s1505_s6] ss:$0 sm:$0xff] }
  0x41   :  { %698 = vmatpush.bf16.msrb.mxu2 %v1274_v10 }
  0x42   :  { %711 = vmatpush.bf16.msrb.mxu3 %v1282_v11 }
  0x43   :  { %673 = vmatpush.bf16.msrb.mxu0 %v1257_v12 }
  0x44   :  { %686 = vmatpush.bf16.msrb.mxu1 %v1265_v13 }
  0x45   :  { %699 = vmatpush.bf16.msrb.mxu2 %v1273_v14 }
  0x46   :  { %712 = vmatpush.bf16.msrb.mxu3 %v1281_v15  ;;  %674 = vmatmul.bf16.vlgmr.msrb.gmra.mxu0 %v94_v20 }
  0x47   :  { %687 = vmatmul.bf16.vlgmr.msrb.gmra.mxu1 %v95_v21  ;;  %788 = vmatpush.bf16.msra.mxu0 %v1296_v24 }
  0x48   :  { %700 = vmatmul.bf16.vlgmr.msrb.gmra.mxu2 %v96_v22  ;;  %871 = vmatpush.bf16.msra.mxu1 %v1304_v39 }
  0x49   :  { %713 = vmatmul.bf16.vlgmr.msrb.gmra.mxu3 %v97_v23 }
  0x4b   :  { %789 = vmatpush.bf16.msra.mxu0 %v1295_v25 }
  0x4c   :  { %872 = vmatpush.bf16.msra.mxu1 %v1303_v42 }
  0x4f   :  { %790 = vmatpush.bf16.msra.mxu0 %v1294_v26 }
  0x50   :  { %873 = vmatpush.bf16.msra.mxu1 %v1302_v44 }
  0x53   :  { %791 = vmatpush.bf16.msra.mxu0 %v1293_v27 }
  0x54   :  { %874 = vmatpush.bf16.msra.mxu1 %v1301_v46 }
  0x57   :  { %792 = vmatpush.bf16.msra.mxu0 %v1292_v28 }
  0x58   :  { %875 = vmatpush.bf16.msra.mxu1 %v1300_v48 }
  0x5b   :  { %793 = vmatpush.bf16.msra.mxu0 %v1291_v30 }
  0x5c   :  { %876 = vmatpush.bf16.msra.mxu1 %v1299_v53 }
  0x5f   :  { %794 = vmatpush.bf16.msra.mxu0 %v1290_v32 }
  0x60   :  { %877 = vmatpush.bf16.msra.mxu1 %v1298_v1 }
  0x63   :  { %795 = vmatpush.bf16.msra.mxu0 %v1289_v36 }
  0x64   :  { %878 = vmatpush.bf16.msra.mxu1 %v1297_v2 }
  0xa3   :  { %v623_v29 = vpop.f32.mrf.mxu0 }
  0xa4   :  { %v636_v31 = vpop.f32.mrf.mxu1  ;;  %v624_v43 = vadd.f32 %v1311_v38, %v623_v29 }
  0xa6   :  { %v637_v45 = vadd.f32 %v636_v31, %v624_v43 }
  0xab   :  { %v649_v33 = vpop.f32.mrf.mxu2  ;;  %v625_v35 = vpop.f32.mrf.mxu0 }
  0xac   :  { %v662_v34 = vpop.f32.mrf.mxu3  ;;  %v638_v37 = vpop.f32.mrf.mxu1  ;;  %v650_v47 = vadd.f32 %v649_v33, %v637_v45 }
  0xae   :  { %v663_v49 = vadd.f32 %v662_v34, %v650_v47 }
  0xb3   :  { %v651_v40 = vpop.f32.mrf.mxu2 }
  0xb4   :  { %v664_v41 = vpop.f32.mrf.mxu3 }
  0xc3   :  { %v675_v50 = vpop.f32.mrf.mxu0 }
  0xc4   :  { %v688_v51 = vpop.f32.mrf.mxu1  ;;  %v676_v52 = vadd.f32 %v675_v50, %v663_v49 }
  0xc6   :  { %v689_v54 = vadd.f32 %v688_v51, %v676_v52 }
  0xcb   :  { %v701_v55 = vpop.f32.mrf.mxu2  ;;  %v677_v58 = vpop.f32.mrf.mxu0 }
  0xcc   :  { %v714_v56 = vpop.f32.mrf.mxu3  ;;  %v702_v57 = vadd.f32 %v701_v55, %v689_v54  ;;  %v690_v59 = vpop.f32.mrf.mxu1 }
  0xce   :  { %v715_v60 = vadd.f32 %v714_v56, %v702_v57 }
  0xd0   :  { %v718_v61 = vmax.f32 %v715_v60, 0.0 }
  0xd2   :  { %v719_v62 = vpack.c.bf16 %v718_v61, %v718_v61 }
  0xd3   :  { %v703_v63 = vpop.f32.mrf.mxu2 }
  0xd4   :  { %v716_v0 = vpop.f32.mrf.mxu3  ;;  %796 = vmatmul.bf16.vlgmr.msra.gmra.mxu0 %v719_v62 }
 0x151   :  { %v797_v4 = vpop.f32.mrf.mxu0 }
 0x152   :  { %v798_v5 = vadd.f32 %v1312_v3, %v797_v4 }
 0x154   :  { %v801_v6 = vmax.f32 %v798_v5, 0.0 }
 0x156   :  { %v802_v7 = vpack.c.bf16 %v801_v6, %v801_v6 }
 0x158   :  { %879 = vmatmul.bf16.vlgmr.msra.gmra.mxu1 %v802_v7 }
 0x159   :  { %v799_v8 = vpop.f32.mrf.mxu0 }
 0x1d5   :  { %v880_v10 = vpop.f32.mrf.mxu1 }
 0x1d6   :  { %v881_v11 = vadd.f32 %v1313_v9, %v880_v10 }
 0x1d8   :  { %885 = vst.msk [vmem:[#allocation5] sm:$0xff] %vm884_vm0, %v881_v11 }
 0x1dd   :  { %v882_v12 = vpop.f32.mrf.mxu1 }
 0x1de   :  { %889 = vsyncadd [#allocation4], 96  ;;  %s892_s4 = sshll.u32 %s1506_s7, 4  ;;  %s1369_s10 = smov [#allocation5]   ;;  %s893_s4 = int_to_ptr.hbm [resolvable:$true] %s892_s4 }
 0x1df   :  { %s890_s11 = sshll.u32 %s1369_s10, 4  ;;  %s1370_s12 = smov 32   ;;  %s891_s11 = int_to_ptr.vmem [resolvable:$true] %s890_s11 }
 0x1e0   :  { %s1371_s13 = smov 2  }
 0x1e1   :  { %898 = dma.vmem_to_hbm [thread:$0]  %s891_s11, 32, %s893_s4, [#allocation4], %s1370_s12, %s1370_s12, %s1371_s13  }
 0x1e2   :  { %1364 = dma.done.wait [#allocation4], 128  }
 0x1e3   :  { %1365 = vsyncadd [#allocation4], 4294967168 }
 0x1e4   :  { %903 = vsyncpa [#allocation3], 1 }
 0x1e5   :  { %904 = vsyncpa [#allocation4], 1 }

</bundles_post_ra>
